<compile_context>
chip_gen: v6e
topology: v6e:2x2x1
jax: 0.10.0
libtpu: 0.0.40
codegen_flags: <defaults>
</compile_context>

<pallas_src>
import jax
import jax.numpy as jnp
import numpy as np
from jax.experimental import pallas as pl
from jax.experimental.pallas import tpu as pltpu

# Small deterministic problem sizes consistent with the module's defaults.
BATCH = 2
CHANNEL = 32           # "channel" of ConvBNReLURes1D
RES_EXPANSION = 1.0
C_MID = int(CHANNEL * RES_EXPANSION)
NPOINTS = 128          # spatial length of the 1-D "conv" axis (lane-dense: 128 lanes)

_BN_EPS = 1e-5         # nn.BatchNorm1d default eps


def conv_bn_relu_res1d_kernel(x_ref, w1_ref, b1_ref, w2_ref, b2_ref, out_ref):
    """x_ref/out_ref: [B, C, N]; w1: [C_mid, C]; b1: [C_mid, 1]; w2: [C, C_mid]; b2: [C, 1].

    Weights/biases already have BatchNorm folded in (inference form), so each stage is a
    plain affine:  BN(Conv1x1(x)) == w_folded @ x + b_folded.
    """
    B = x_ref.shape[0]
    N = x_ref.shape[2]

    w1 = w1_ref[...]
    b1 = b1_ref[...]          # [C_mid, 1] -> lane-broadcasts once against [C_mid, B*N]
    w2 = w2_ref[...]
    b2 = b2_ref[...]          # [C, 1]

    # Lane-concatenate the (tiny, static) batch: [C, B*N] = [32, 256].
    # One matmul per layer instead of B; fills the 256-wide MXU on v6e/v7x and halves
    # vmatmul push/pop sequences on v5e. Bias/ReLU/residual broadcasts happen once.
    x_all = jnp.concatenate([x_ref[b] for b in range(B)], axis=1)          # [C, B*N]

    # net1: Conv1x1 + BN (folded) + ReLU
    h = jnp.dot(w1, x_all, preferred_element_type=jnp.float32) + b1        # [C_mid, B*N]
    h = jnp.maximum(h, 0.0)

    # net2: Conv1x1 + BN (folded), then residual + ReLU
    y = jnp.dot(w2, h, preferred_element_type=jnp.float32) + b2 + x_all    # [C, B*N]
    y = jnp.maximum(y, 0.0)

    # Split back to the module's [B, C, N] layout; each store is a full-width
    # (128-lane) unmasked vst.
    for b in range(B):
        out_ref[b] = y[:, b * N:(b + 1) * N]


def conv_bn_relu_res1d_forward(x_bcn, folded_params):
    """x_bcn: [B, C, N] float32 (same layout as the PyTorch Conv1d input)."""
    w1f, b1f, w2f, b2f = folded_params
    B, C, N = x_bcn.shape
    c_mid = w1f.shape[0]

    return pl.pallas_call(
        conv_bn_relu_res1d_kernel,
        out_shape=jax.ShapeDtypeStruct((B, C, N), jnp.float32),
        grid=(1,),  # single invocation: whole batch in one block (no per-step overhead)
        in_specs=[
            pl.BlockSpec((B, C, N), lambda i: (0, 0, 0)),        # x (full tensor)
            pl.BlockSpec((c_mid, C), lambda i: (0, 0)),          # folded conv1 weight
            pl.BlockSpec((c_mid, 1), lambda i: (0, 0)),          # folded conv1 bias (column)
            pl.BlockSpec((C, c_mid), lambda i: (0, 0)),          # folded conv2 weight
            pl.BlockSpec((C, 1), lambda i: (0, 0)),              # folded conv2 bias (column)
        ],
        out_specs=pl.BlockSpec((B, C, N), lambda i: (0, 0, 0)),
        compiler_params=pltpu.CompilerParams(
            dimension_semantics=("arbitrary",)),
    )(x_bcn, w1f, b1f, w2f, b2f)


def fold_bn_into_conv(w, b, gamma, beta, mean, var):
    """Fold inference-mode BatchNorm1d into a 1x1 Conv1d.

    BN(Conv(x)) = s * (W x + b - mean) + beta  with  s = gamma / sqrt(var + eps)
                = (s[:,None] * W) x + ((b - mean) * s + beta)
    Returns (w_folded [O, C], b_folded [O, 1]) — bias as a column so it lane-broadcasts.
    """
    s = gamma / jnp.sqrt(var + _BN_EPS)
    w_f = w * s[:, None]
    b_f = (b - mean) * s + beta
    return w_f, b_f[:, None]


def reference_forward(x, raw_params):
    """Pure-JAX transcription of the PyTorch forward (inference-mode BN), for checking."""
    (w1, c1b, g1, be1, m1, v1, w2, c2b, g2, be2, m2, v2) = raw_params

    def conv1x1(t, w, b):                       # t: [B, C, N], w: [O, C], b: [O]
        return jnp.einsum('oc,bcn->bon', w, t) + b[None, :, None]

    def bn(t, g, be, m, v):                     # eval-mode BatchNorm1d
        s = g / jnp.sqrt(v + _BN_EPS)
        return (t - m[None, :, None]) * s[None, :, None] + be[None, :, None]

    h = jax.nn.relu(bn(conv1x1(x, w1, c1b), g1, be1, m1, v1))      # net1
    y = bn(conv1x1(h, w2, c2b), g2, be2, m2, v2)                   # net2
    return jax.nn.relu(y + x)                                      # act(net2(net1(x)) + x)


if __name__ == "__main__":
    key = jax.random.PRNGKey(0)
    ks = jax.random.split(key, 13)

    x = jax.random.normal(ks[0], (BATCH, CHANNEL, NPOINTS), jnp.float32)

    # Deterministic synthetic parameters (conv weights stored as [out, in] like nn.Conv1d).
    w1 = 0.1 * jax.random.normal(ks[1], (C_MID, CHANNEL), jnp.float32)
    c1b = 0.1 * jax.random.normal(ks[2], (C_MID,), jnp.float32)
    g1 = 1.0 + 0.1 * jax.random.normal(ks[3], (C_MID,), jnp.float32)
    be1 = 0.1 * jax.random.normal(ks[4], (C_MID,), jnp.float32)
    m1 = 0.1 * jax.random.normal(ks[5], (C_MID,), jnp.float32)
    v1 = jax.random.uniform(ks[6], (C_MID,), jnp.float32, 0.5, 1.5)

    w2 = 0.1 * jax.random.normal(ks[7], (CHANNEL, C_MID), jnp.float32)
    c2b = 0.1 * jax.random.normal(ks[8], (CHANNEL,), jnp.float32)
    g2 = 1.0 + 0.1 * jax.random.normal(ks[9], (CHANNEL,), jnp.float32)
    be2 = 0.1 * jax.random.normal(ks[10], (CHANNEL,), jnp.float32)
    m2 = 0.1 * jax.random.normal(ks[11], (CHANNEL,), jnp.float32)
    v2 = jax.random.uniform(ks[12], (CHANNEL,), jnp.float32, 0.5, 1.5)

    raw_params = (w1, c1b, g1, be1, m1, v1, w2, c2b, g2, be2, m2, v2)

    # Fold BN into the 1x1 convs once (tiny arrays, done outside the kernel).
    w1f, b1f = fold_bn_into_conv(w1, c1b, g1, be1, m1, v1)
    w2f, b2f = fold_bn_into_conv(w2, c2b, g2, be2, m2, v2)

    out = conv_bn_relu_res1d_forward(x, (w1f, b1f, w2f, b2f))
    jax.block_until_ready(out)

    ref = reference_forward(x, raw_params)
    np.testing.assert_allclose(np.asarray(out), np.asarray(ref), rtol=1e-4, atol=1e-4)

    print("KERNEL_OK")
</pallas_src>

<mosaic_0001>
module attributes {stable_mosaic.version = 11 : i64} {
  func.func @conv_bn_relu_res1d_kernel(%arg0: i32, %arg1: memref<2x32x128xf32, #tpu.memory_space<vmem>>, %arg2: memref<32x32xf32, #tpu.memory_space<vmem>>, %arg3: memref<32x1xf32, #tpu.memory_space<vmem>>, %arg4: memref<32x32xf32, #tpu.memory_space<vmem>>, %arg5: memref<32x1xf32, #tpu.memory_space<vmem>>, %arg6: memref<2x32x128xf32, #tpu.memory_space<vmem>>) attributes {dimension_semantics = [#tpu.dimension_semantics<arbitrary>], iteration_bounds = array<i64: 1>, scalar_prefetch = 0 : i64, scratch_operands = 0 : i64, tpu.core_type = #tpu.core_type<tc>, window_params = [{pipeline_mode = #tpu.pipeline_mode<synchronous>, transform_indices = @transform_0, window_bounds = array<i64: 2, 32, 128>}, {pipeline_mode = #tpu.pipeline_mode<synchronous>, transform_indices = @transform_1, window_bounds = array<i64: 32, 32>}, {pipeline_mode = #tpu.pipeline_mode<synchronous>, transform_indices = @transform_2, window_bounds = array<i64: 32, 1>}, {pipeline_mode = #tpu.pipeline_mode<synchronous>, transform_indices = @transform_3, window_bounds = array<i64: 32, 32>}, {pipeline_mode = #tpu.pipeline_mode<synchronous>, transform_indices = @transform_4, window_bounds = array<i64: 32, 1>}, {pipeline_mode = #tpu.pipeline_mode<synchronous>, transform_indices = @transform_5, window_bounds = array<i64: 2, 32, 128>}]} {
    %c0 = arith.constant 0 : index
    %c0_0 = arith.constant 0 : index
    %0 = vector.load %arg2[%c0, %c0_0] : memref<32x32xf32, #tpu.memory_space<vmem>>, vector<32x32xf32>
    %c0_1 = arith.constant 0 : index
    %c0_2 = arith.constant 0 : index
    %1 = vector.load %arg3[%c0_1, %c0_2] : memref<32x1xf32, #tpu.memory_space<vmem>>, vector<32x1xf32>
    %c0_3 = arith.constant 0 : index
    %c0_4 = arith.constant 0 : index
    %2 = vector.load %arg4[%c0_3, %c0_4] : memref<32x32xf32, #tpu.memory_space<vmem>>, vector<32x32xf32>
    %c0_5 = arith.constant 0 : index
    %c0_6 = arith.constant 0 : index
    %3 = vector.load %arg5[%c0_5, %c0_6] : memref<32x1xf32, #tpu.memory_space<vmem>>, vector<32x1xf32>
    %c0_7 = arith.constant 0 : index
    %c0_8 = arith.constant 0 : index
    %c0_9 = arith.constant 0 : index
    %4 = vector.load %arg1[%c0_7, %c0_8, %c0_9] : memref<2x32x128xf32, #tpu.memory_space<vmem>>, vector<1x32x128xf32>
    %5 = vector.shape_cast %4 : vector<1x32x128xf32> to vector<32x128xf32>
    %c1 = arith.constant 1 : index
    %c0_10 = arith.constant 0 : index
    %c0_11 = arith.constant 0 : index
    %6 = vector.load %arg1[%c1, %c0_10, %c0_11] : memref<2x32x128xf32, #tpu.memory_space<vmem>>, vector<1x32x128xf32>
    %7 = vector.shape_cast %6 : vector<1x32x128xf32> to vector<32x128xf32>
    %8 = tpu.concatenate %5, %7 in 1 : vector<32x128xf32>, vector<32x128xf32> -> vector<32x256xf32>
    %cst = arith.constant dense<0.000000e+00> : vector<32x256xf32>
    %9 = tpu.matmul %0, %8, %cst {dimension_numbers = #tpu.dot_dimension_numbers<[1], [0], [0], [1], [0, 0, 1, 1], [], []>} : vector<32x32xf32>, vector<32x256xf32>, vector<32x256xf32> -> vector<32x256xf32>
    %10 = vector.broadcast %1 : vector<32x1xf32> to vector<32x256xf32>
    %11 = arith.addf %9, %10 : vector<32x256xf32>
    %cst_12 = arith.constant 0.000000e+00 : f32
    %12 = vector.broadcast %cst_12 : f32 to vector<32x256xf32>
    %13 = arith.maximumf %11, %12 : vector<32x256xf32>
    %cst_13 = arith.constant dense<0.000000e+00> : vector<32x256xf32>
    %14 = tpu.matmul %2, %13, %cst_13 {dimension_numbers = #tpu.dot_dimension_numbers<[1], [0], [0], [1], [0, 0, 1, 1], [], []>} : vector<32x32xf32>, vector<32x256xf32>, vector<32x256xf32> -> vector<32x256xf32>
    %15 = vector.broadcast %3 : vector<32x1xf32> to vector<32x256xf32>
    %16 = arith.addf %14, %15 : vector<32x256xf32>
    %17 = arith.addf %16, %8 : vector<32x256xf32>
    %cst_14 = arith.constant 0.000000e+00 : f32
    %18 = vector.broadcast %cst_14 : f32 to vector<32x256xf32>
    %19 = arith.maximumf %17, %18 : vector<32x256xf32>
    %20 = vector.extract_strided_slice %19 {offsets = [0, 0], sizes = [32, 128], strides = [1, 1]} : vector<32x256xf32> to vector<32x128xf32>
    %c0_15 = arith.constant 0 : index
    %c0_16 = arith.constant 0 : index
    %c0_17 = arith.constant 0 : index
    %21 = vector.load %arg6[%c0_15, %c0_16, %c0_17] : memref<2x32x128xf32, #tpu.memory_space<vmem>>, vector<1x32x128xf32>
    %22 = vector.shape_cast %21 : vector<1x32x128xf32> to vector<32x128xf32>
    %23 = vector.shape_cast %20 : vector<32x128xf32> to vector<1x32x128xf32>
    tpu.vector_store %arg6[%c0_15, %c0_16, %c0_17], %23 {strides = array<i32>} : memref<2x32x128xf32, #tpu.memory_space<vmem>>, vector<1x32x128xf32>,
    %24 = vector.extract_strided_slice %19 {offsets = [0, 128], sizes = [32, 128], strides = [1, 1]} : vector<32x256xf32> to vector<32x128xf32>
    %c1_18 = arith.constant 1 : index
    %c0_19 = arith.constant 0 : index
    %c0_20 = arith.constant 0 : index
    %25 = vector.load %arg6[%c1_18, %c0_19, %c0_20] : memref<2x32x128xf32, #tpu.memory_space<vmem>>, vector<1x32x128xf32>
    %26 = vector.shape_cast %25 : vector<1x32x128xf32> to vector<32x128xf32>
    %27 = vector.shape_cast %24 : vector<32x128xf32> to vector<1x32x128xf32>
    tpu.vector_store %arg6[%c1_18, %c0_19, %c0_20], %27 {strides = array<i32>} : memref<2x32x128xf32, #tpu.memory_space<vmem>>, vector<1x32x128xf32>,
    return
  }
  func.func @transform_0(%arg0: i32) -> (i32, i32, i32) {
    %c0_i32 = arith.constant 0 : i32
    %c0_i32_0 = arith.constant 0 : i32
    %c0_i32_1 = arith.constant 0 : i32
    %c0_i32_2 = arith.constant 0 : i32
    return %c0_i32, %c0_i32_0, %c0_i32_1 : i32, i32, i32
  }
  func.func @transform_1(%arg0: i32) -> (i32, i32) {
    %c0_i32 = arith.constant 0 : i32
    %c0_i32_0 = arith.constant 0 : i32
    %c0_i32_1 = arith.constant 0 : i32
    return %c0_i32, %c0_i32_0 : i32, i32
  }
  func.func @transform_2(%arg0: i32) -> (i32, i32) {
    %c0_i32 = arith.constant 0 : i32
    %c0_i32_0 = arith.constant 0 : i32
    %c0_i32_1 = arith.constant 0 : i32
    return %c0_i32, %c0_i32_0 : i32, i32
  }
  func.func @transform_3(%arg0: i32) -> (i32, i32) {
    %c0_i32 = arith.constant 0 : i32
    %c0_i32_0 = arith.constant 0 : i32
    %c0_i32_1 = arith.constant 0 : i32
    return %c0_i32, %c0_i32_0 : i32, i32
  }
  func.func @transform_4(%arg0: i32) -> (i32, i32) {
    %c0_i32 = arith.constant 0 : i32
    %c0_i32_0 = arith.constant 0 : i32
    %c0_i32_1 = arith.constant 0 : i32
    return %c0_i32, %c0_i32_0 : i32, i32
  }
  func.func @transform_5(%arg0: i32) -> (i32, i32, i32) {
    %c0_i32 = arith.constant 0 : i32
    %c0_i32_0 = arith.constant 0 : i32
    %c0_i32_1 = arith.constant 0 : i32
    %c0_i32_2 = arith.constant 0 : i32
    return %c0_i32, %c0_i32_0, %c0_i32_1 : i32, i32, i32
  }
}

</mosaic_0001>

<bundles_post_ra>
// kernel: tpu_custom_call.1
= control target key start
LH: loop header
LB: loop body
LE: loop exit
PB: predicated region body
PF: predicated region fallthrough
CT: control target
= control target key end

     0   :  { %10 = vsyncpa [#allocation3], 0  ;;  %s606_s0 = inlined_call_operand.vmem [shape: f32[2,32,128], index: 0, kind: input, shape index: {}]   ;;  %s607_s1 = inlined_call_operand.hbm [shape: f32[32,32], index: 1, kind: input, shape index: {}]   ;;  %s608_s2 = inlined_call_operand.vmem [shape: f32[32,1], index: 2, kind: input, shape index: {}]   ;;  %s609_s3 = inlined_call_operand.hbm [shape: f32[32,32], index: 3, kind: input, shape index: {}]   ;;  %s610_s4 = inlined_call_operand.vmem [shape: f32[32,1], index: 4, kind: input, shape index: {}]   ;;  %s611_s5 = inlined_call_operand.hbm [shape: f32[2,32,128], index: 5, kind: output, shape index: {}]  }
   0x1   :  { %11 = vsyncpa [#allocation6], 0 }
   0x2   :  { %12 = vsyncpa [#allocation4], 0  ;;  %s455_s18 = smov [#allocation2]  }
   0x3   :  { %s20_s19 = sshll.u32 %s455_s18, 4  ;;  %s21_s19 = int_to_ptr.vmem [resolvable:$true] %s20_s19 }
   0x4   :  { %s397_s20 = scalar_lea.vmem %s21_s19, 512  ;;  %p402_p1 = scmp.lt.s32.totalorder %s21_s19, %s21_s19 }
   0x5   :  { %p398_p0 = scmp.ne.s32.totalorder %s21_s19, %s397_s20  ;;  %p403_p2 = scmp.lt.s32.totalorder %s397_s20, %s397_s20 }
   0x7   :  { %p404_p3 = por %p403_p2, %p402_p1 }
   0x9   :  { %p405_p4 = pnand %p404_p3, %p398_p0 }
   0xb   :  { %408 = shalt.err (!%p405_p4)
}
   0xc   :  { %s456_s21 = smov 128   ;;  %s457_s22 = smov 8  }
   0xd   :  { %26 = dma.hbm_to_vmem [thread:$0]  %s607_s1, 512, %s21_s19, [#allocation3], %s456_s21, %s456_s21, %s457_s22  }
   0xe   :  { %s458_s25 = smov [#allocation5]  }
   0xf   :  { %s34_s26 = sshll.u32 %s458_s25, 4  ;;  %s35_s26 = int_to_ptr.vmem [resolvable:$true] %s34_s26 }
  0x10   :  { %s417_s27 = scalar_lea.vmem %s35_s26, 512  ;;  %p422_p6 = scmp.lt.s32.totalorder %s35_s26, %s35_s26 }
  0x11   :  { %p418_p5 = scmp.ne.s32.totalorder %s35_s26, %s417_s27  ;;  %p423_p7 = scmp.lt.s32.totalorder %s417_s27, %s417_s27 }
  0x13   :  { %p424_p8 = por %p423_p7, %p422_p6 }
  0x15   :  { %p425_p9 = pnand %p424_p8, %p418_p5 }
  0x17   :  { %428 = shalt.err (!%p425_p9)
}
  0x18   :  { %40 = dma.hbm_to_vmem [thread:$0]  %s609_s3, 512, %s35_s26, [#allocation6], %s456_s21, %s456_s21, %s457_s22  }
  0x19   :  { %449 = dma.done.wait [#allocation3], 512  }
  0x1a   :  { %450 = vsyncadd [#allocation3], 4294966784 }
  0x1b   :  { %451 = dma.done.wait [#allocation6], 512  }
  0x1c   :  { %452 = vsyncadd [#allocation6], 4294966784  ;;  %v459_v0 = vmov 0.0   ;;  %v460_v1 = vmov 0   ;;  %v509_v2 = vld [vmem:[%s606_s0 + $0x38] sm:$0xff]  ;;  %v519_v4 = vld [vmem:[%s606_s0 + $0x30] sm:$0xff] }
  0x1d   :  { %171 = vmatprep.mubr.f32.mxu0 %v459_v0  ;;  %388 = vset.pattern.permute.xlu1 %v460_v1  ;;  %v514_v3 = vld [vmem:[%s606_s0 + $0x18] sm:$0xff]  ;;  %v525_v5 = vld [vmem:[%s606_s0 + $0x10] sm:$0xff]  ;;  %v531_v6 = vld [vmem:[%s606_s0 + $0x28] sm:$0xff]  ;;  %vm94_vm0 = vcmask 261120  }
  0x1e   :  { %387 = vset.pattern.permute.xlu0 %v460_v1  ;;  %300 = vmatprep.mubr.f32.mxu1 %v459_v0  ;;  %v537_v7 = vld [vmem:[%s606_s0 + $0x8] sm:$0xff]  ;;  %v543_v8 = vld [vmem:[%s606_s0 + $0x20] sm:$0xff]  ;;  %v56_v10 = vld [vmem:[%s608_s2 + $0x18] sm:$0xff] }
  0x1f   :  { %131 = vmatprep.subr.mxu0 %v509_v2  ;;  %v54_v9 = vld [vmem:[%s608_s2 + $0x8] sm:$0xff]  ;;  %v555_v11 = vld [vmem:[%s606_s0] sm:$0xff]  ;;  %91 = vperm.xlu0 %387, %v56_v10   ;;  %v55_v14 = vld [vmem:[%s608_s2 + $0x10] sm:$0xff] }
  0x20   :  { %132 = vmatpush1.msra.mxu0 %v514_v3  ;;  %81 = vperm.xlu1 %388, %v54_v9   ;;  %v49_v12 = vld [vmem:[#allocation2] sm:$0xff]  ;;  %v50_v15 = vld [vmem:[#allocation2 + $0x8] sm:$0xff]  ;;  %v51_v18 = vld [vmem:[#allocation2 + $0x10] sm:$0xff] }
  0x21   :  { %133 = vmatprep.subr.mxu0 %v519_v4  ;;  %v53_v13 = vld [vmem:[%s608_s2] sm:$0xff]  ;;  %v62_v16 = vld [vmem:[%s610_s4 + $0x8] sm:$0xff]  ;;  %v64_v19 = vld [vmem:[%s610_s4 + $0x18] sm:$0xff] }
  0x22   :  { %134 = vmatpush1.msra.mxu0 %v525_v5  ;;  %v61_v17 = vld [vmem:[%s610_s4] sm:$0xff]  ;;  %v63_v20 = vld [vmem:[%s610_s4 + $0x10] sm:$0xff]  ;;  %v52_v21 = vld [vmem:[#allocation2 + $0x18] sm:$0xff]  ;;  %s461_s4 = smov [#allocation7]  }
  0x23   :  { %135 = vmatprep.subr.mxu0 %v531_v6  ;;  %86 = vperm.xlu0 %387, %v55_v14   ;;  %v57_v50 = vld [vmem:[#allocation5] sm:$0xff]  ;;  %v58_v51 = vld [vmem:[#allocation5 + $0x8] sm:$0xff]  ;;  %v59_v52 = vld [vmem:[#allocation5 + $0x10] sm:$0xff]  ;;  %s355_s8 = sshll.u32 %s461_s4, 4  ;;  %s356_s8 = int_to_ptr.vmem [resolvable:$true] %s355_s8 }
  0x24   :  { %136 = vmatpush1.msra.mxu0 %v537_v7  ;;  %76 = vperm.xlu1 %388, %v53_v13   ;;  %v60_v53 = vld [vmem:[#allocation5 + $0x18] sm:$0xff]  ;;  %s429_s9 = scalar_lea.vmem %s356_s8, 1024  ;;  %p434_p11 = scmp.lt.s32.totalorder %s356_s8, %s356_s8 }
  0x25   :  { %137 = vmatprep.subr.mxu0 %v543_v8  ;;  %p430_p10 = scmp.ne.s32.totalorder %s356_s8, %s429_s9  ;;  %p435_p12 = scmp.lt.s32.totalorder %s429_s9, %s429_s9 }
  0x26   :  { %138 = vmatpush1.msra.mxu0 %v555_v11 }
  0x27   :  { %372 = vmatmul.mubr.msk.f32.vlgmr.msra.gmra.mxu0 %vm94_vm0, %v49_v12  ;;  %206 = vperm.xlu0 %387, %v61_v17   ;;  %p436_p13 = por %p435_p12, %p434_p11 }
  0x28   :  { %177 = vmatprep.mubr.f32.mxu0 %v459_v0  ;;  %211 = vperm.xlu1 %388, %v62_v16  }
  0x29   :  { %p437_p0 = pnand %p436_p13, %p430_p10 }
  0x2b   :  { %373 = vmatmul.mubr.msk.f32.gmra.mxu0 %vm94_vm0, %v50_v15  ;;  %216 = vperm.xlu0 %387, %v63_v20  }
  0x2c   :  { %183 = vmatprep.mubr.f32.mxu0 %v459_v0  ;;  %221 = vperm.xlu1 %388, %v64_v19  }
  0x2f   :  { %374 = vmatmul.mubr.msk.f32.gmra.mxu0 %vm94_vm0, %v51_v18 }
  0x30   :  { %189 = vmatprep.mubr.f32.mxu0 %v459_v0 }
  0x33   :  { %375 = vmatmul.mubr.msk.f32.gmra.mxu0 %vm94_vm0, %v52_v21 }
  0x9a   :  { %v92_v26 = vpop.permute.xlu0 %91 }
  0x9b   :  { %v82_v29 = vpop.permute.xlu1 %81 }
  0x9e   :  { %v87_v31 = vpop.permute.xlu0 %86 }
  0x9f   :  { %v77_v37 = vpop.permute.xlu1 %76 }
  0xa2   :  { %v207_v54 = vpop.permute.xlu0 %206 }
  0xa3   :  { %v212_v60 = vpop.permute.xlu1 %211 }
  0xa6   :  { %v217_v13 = vpop.permute.xlu0 %216 }
  0xa7   :  { %v222_v20 = vpop.permute.xlu1 %221 }
  0xe7   :  { %v173_v22 = vpop.f32.mrf.mxu0 }
  0xe8   :  { %v174_v44 = vadd.f32 %v173_v22, %v77_v37 }
  0xe9   :  { %v175_v23 = vpop.f32.mrf.mxu0 }
  0xea   :  { %v176_v42 = vadd.f32 %v175_v23, %v77_v37  ;;  %v196_v49 = vmax.f32 %v174_v44, 0.0 }
  0xeb   :  { %v179_v24 = vpop.f32.mrf.mxu0 }
  0xec   :  { %v180_v40 = vadd.f32 %v179_v24, %v82_v29  ;;  %v197_v48 = vmax.f32 %v176_v42, 0.0 }
  0xed   :  { %v181_v25 = vpop.f32.mrf.mxu0 }
  0xee   :  { %v182_v38 = vadd.f32 %v181_v25, %v82_v29  ;;  %v198_v47 = vmax.f32 %v180_v40, 0.0 }
  0xef   :  { %v185_v27 = vpop.f32.mrf.mxu0 }
  0xf0   :  { %v186_v36 = vadd.f32 %v185_v27, %v87_v31  ;;  %v199_v46 = vmax.f32 %v182_v38, 0.0 }
  0xf1   :  { %v187_v28 = vpop.f32.mrf.mxu0 }
  0xf2   :  { %v188_v34 = vadd.f32 %v187_v28, %v87_v31  ;;  %v200_v45 = vmax.f32 %v186_v36, 0.0 }
  0xf3   :  { %v191_v30 = vpop.f32.mrf.mxu0 }
  0xf4   :  { %v192_v32 = vadd.f32 %v191_v30, %v92_v26  ;;  %v201_v43 = vmax.f32 %v188_v34, 0.0 }
  0xf5   :  { %v193_v33 = vpop.f32.mrf.mxu0 }
  0xf6   :  { %v194_v35 = vadd.f32 %v193_v33, %v92_v26  ;;  %v202_v41 = vmax.f32 %v192_v32, 0.0 }
  0xf8   :  { %v203_v39 = vmax.f32 %v194_v35, 0.0 }
  0xfa   :  { %260 = vmatprep.subr.mxu1 %v203_v39 }
  0xfb   :  { %261 = vmatpush1.msra.mxu1 %v202_v41 }
  0xfc   :  { %262 = vmatprep.subr.mxu1 %v201_v43 }
  0xfd   :  { %263 = vmatpush1.msra.mxu1 %v200_v45 }
  0xfe   :  { %264 = vmatprep.subr.mxu1 %v199_v46 }
  0xff   :  { %265 = vmatpush1.msra.mxu1 %v198_v47 }
 0x100   :  { %266 = vmatprep.subr.mxu1 %v197_v48 }
 0x101   :  { %267 = vmatpush1.msra.mxu1 %v196_v49 }
 0x102   :  { %376 = vmatmul.mubr.msk.f32.vlgmr.msra.gmra.mxu1 %vm94_vm0, %v57_v50 }
 0x103   :  { %306 = vmatprep.mubr.f32.mxu1 %v459_v0 }
 0x106   :  { %377 = vmatmul.mubr.msk.f32.gmra.mxu1 %vm94_vm0, %v58_v51 }
 0x107   :  { %312 = vmatprep.mubr.f32.mxu1 %v459_v0 }
 0x10a   :  { %378 = vmatmul.mubr.msk.f32.gmra.mxu1 %vm94_vm0, %v59_v52 }
 0x10b   :  { %318 = vmatprep.mubr.f32.mxu1 %v459_v0 }
 0x10e   :  { %379 = vmatmul.mubr.msk.f32.gmra.mxu1 %vm94_vm0, %v60_v53 }
 0x1c2   :  { %v302_v55 = vpop.f32.mrf.mxu1 }
 0x1c3   :  { %v303_v56 = vadd.f32 %v302_v55, %v207_v54 }
 0x1c4   :  { %v304_v57 = vpop.f32.mrf.mxu1 }
 0x1c5   :  { %v325_v58 = vadd.f32 %v303_v56, %v555_v11  ;;  %v305_v59 = vadd.f32 %v304_v57, %v207_v54 }
 0x1c6   :  { %v308_v61 = vpop.f32.mrf.mxu1 }
 0x1c7   :  { %v333_v62 = vmax.f32 %v325_v58, 0.0  ;;  %v326_v63 = vadd.f32 %v543_v8, %v305_v59  ;;  %v309_v1 = vadd.f32 %v308_v61, %v212_v60 }
 0x1c8   :  { %v310_v9 = vpop.f32.mrf.mxu1 }
 0x1c9   :  { %341 = vst [vmem:[#allocation7] sm:$0xff] %v333_v62  ;;  %v334_v10 = vmax.f32 %v326_v63, 0.0  ;;  %v327_v0 = vadd.f32 %v309_v1, %v537_v7  ;;  %v311_v12 = vadd.f32 %v310_v9, %v212_v60 }
 0x1ca   :  { %v314_v14 = vpop.f32.mrf.mxu1 }
 0x1cb   :  { %346 = vst [vmem:[#allocation7 + $0x20] sm:$0xff] %v334_v10  ;;  %v335_v15 = vmax.f32 %v327_v0, 0.0  ;;  %v328_v16 = vadd.f32 %v531_v6, %v311_v12  ;;  %v315_v11 = vadd.f32 %v314_v14, %v217_v13 }
 0x1cc   :  { %v316_v17 = vpop.f32.mrf.mxu1 }
 0x1cd   :  { %342 = vst [vmem:[#allocation7 + $0x8] sm:$0xff] %v335_v15  ;;  %v336_v18 = vmax.f32 %v328_v16, 0.0  ;;  %v329_v19 = vadd.f32 %v315_v11, %v525_v5  ;;  %v317_v8 = vadd.f32 %v316_v17, %v217_v13 }
 0x1ce   :  { %v320_v21 = vpop.f32.mrf.mxu1 }
 0x1cf   :  { %347 = vst [vmem:[#allocation7 + $0x28] sm:$0xff] %v336_v18  ;;  %v337_v22 = vmax.f32 %v329_v19, 0.0  ;;  %v330_v7 = vadd.f32 %v519_v4, %v317_v8  ;;  %v321_v23 = vadd.f32 %v320_v21, %v222_v20 }
 0x1d0   :  { %v322_v24 = vpop.f32.mrf.mxu1 }
 0x1d1   :  { %343 = vst [vmem:[#allocation7 + $0x10] sm:$0xff] %v337_v22  ;;  %v338_v25 = vmax.f32 %v330_v7, 0.0  ;;  %v331_v26 = vadd.f32 %v321_v23, %v514_v3  ;;  %v323_v6 = vadd.f32 %v322_v24, %v222_v20 }
 0x1d3   :  { %348 = vst [vmem:[#allocation7 + $0x30] sm:$0xff] %v338_v25  ;;  %v339_v27 = vmax.f32 %v331_v26, 0.0  ;;  %v332_v5 = vadd.f32 %v509_v2, %v323_v6 }
 0x1d5   :  { %344 = vst [vmem:[#allocation7 + $0x18] sm:$0xff] %v339_v27  ;;  %v340_v28 = vmax.f32 %v332_v5, 0.0 }
 0x1d7   :  { %349 = vst [vmem:[#allocation7 + $0x38] sm:$0xff] %v340_v28 }
 0x1d8   :  { %440 = shalt.err (!%p437_p0)
}
 0x1d9   :  { %361 = dma.vmem_to_hbm [thread:$0]  %s356_s8, 1024, %s611_s5, [#allocation4], %s456_s21, %s456_s21, %s457_s22  }
 0x1da   :  { %453 = dma.done.wait [#allocation4], 1024  }
 0x1db   :  { %454 = vsyncadd [#allocation4], 4294966272 }
 0x1dc   :  { %365 = vsyncpa [#allocation3], 1 }
 0x1dd   :  { %366 = vsyncpa [#allocation6], 1 }
 0x1de   :  { %367 = vsyncpa [#allocation4], 1 }

</bundles_post_ra>
